<compile_context>
chip_gen: v7x
topology: tpu7x:2x2x1
jax: 0.10.0
libtpu: 0.0.40
codegen_flags: <defaults>
</compile_context>

<pallas_src>
import jax
import jax.numpy as jnp
from jax.experimental import pallas as pl
from jax.experimental.pallas import tpu as pltpu


def mlp_kernel(x_ref, w1_ref, b1_ref, w2_ref, b2_ref, out_ref):
    # fc1: (bt, D) @ (D, Hp) + (1, Hp)   (padded hidden columns are all-zero weights)
    h = jnp.dot(x_ref[...], w1_ref[...], preferred_element_type=jnp.float32)
    h = h + b1_ref[...]
    # ELU (alpha = 1.0), matching torch.nn.ELU default. ELU(0) = 0, so padded hidden
    # lanes stay exactly 0 and contribute nothing to fc2. jnp.exp runs on the EUP slot.
    h = jnp.where(h > 0, h, jnp.exp(h) - 1.0)
    # fc2: (bt, Hp) @ (Hp, Cp) + (1, Cp)  -- full 128-lane MXU tile for the compute;
    # padded class lanes get a -1e30 bias so softmax assigns them exactly 0 weight.
    logits = jnp.dot(h, w2_ref[...], preferred_element_type=jnp.float32)
    logits = logits + b2_ref[...]
    # softmax over dim=1 (class axis), numerically stable
    m = jnp.max(logits, axis=1, keepdims=True)
    e = jnp.exp(logits - m)
    denom = jnp.sum(e, axis=1, keepdims=True)
    # reciprocal on EUP path; approx=False keeps the 1e-5 accuracy contract.
    probs = e * pl.reciprocal(denom, approx=False)
    # Lane-compact store: only the C real class columns hit HBM (masked vst, but the
    # ~32x write-traffic reduction dominates in this DMA-bound regime).
    C = out_ref.shape[1]
    out_ref[...] = probs[:, :C].astype(out_ref.dtype)


def mlp_forward(x, w1, b1, w2, b2, *, batch_tile=8192):
    """x: (B, D); w1: (D, H); b1: (H,) or (1, H); w2: (H, C); b2: (C,) or (1, C)."""
    B, D = x.shape
    H = w1.shape[1]
    C = w2.shape[1]

    LANE = 128
    SUBLANE = 8

    # Pad hidden and class dims up to a full 128-lane tile (done once, outside kernel).
    Hp = max(LANE, pl.cdiv(H, LANE) * LANE)
    Cp = max(LANE, pl.cdiv(C, LANE) * LANE)

    w1_p = jnp.zeros((D, Hp), jnp.float32).at[:, :H].set(w1.astype(jnp.float32))
    b1_p = jnp.zeros((1, Hp), jnp.float32).at[:, :H].set(
        b1.reshape(1, H).astype(jnp.float32))
    w2_p = jnp.zeros((Hp, Cp), jnp.float32).at[:H, :C].set(w2.astype(jnp.float32))
    # Padded class lanes: huge negative bias so exp(logit - max) == 0 for those lanes.
    b2_p = jnp.full((1, Cp), -1e30, jnp.float32).at[:, :C].set(
        b2.reshape(1, C).astype(jnp.float32))

    # Batch tile: large enough to amortize the ~0.35 us per-grid-step overhead of this
    # memory-bound kernel, multiple of 8 sublanes, and capped at ~half the batch so the
    # "parallel" grid axis has >=2 steps (keeps both v7x TensorCores busy).
    half_b = -(-B // 2)
    cap = max(SUBLANE, -(-half_b // SUBLANE) * SUBLANE)
    bt = max(SUBLANE, min(int(batch_tile), cap))
    bt = (bt // SUBLANE) * SUBLANE
    grid = (pl.cdiv(B, bt),)  # uneven tail tile handled by Pallas block masking

    out = pl.pallas_call(
        mlp_kernel,
        out_shape=jax.ShapeDtypeStruct((B, C), jnp.float32),
        grid=grid,
        in_specs=[
            pl.BlockSpec((bt, D), lambda i: (i, 0)),     # batch tile, pipelined
            pl.BlockSpec((D, Hp), lambda i: (0, 0)),     # weights VMEM-resident
            pl.BlockSpec((1, Hp), lambda i: (0, 0)),
            pl.BlockSpec((Hp, Cp), lambda i: (0, 0)),
            pl.BlockSpec((1, Cp), lambda i: (0, 0)),
        ],
        out_specs=pl.BlockSpec((bt, C), lambda i: (i, 0)),   # compact (C=4) output
        compiler_params=pltpu.CompilerParams(
            dimension_semantics=("parallel",),          # megacore sharding on v7x
            vmem_limit_bytes=48 * 1024 * 1024,          # safe within v7x's 64 MiB VMEM
        ),
    )(x.astype(jnp.float32), w1_p, b1_p, w2_p, b2_p)
    return out


def reference_forward(x, w1, b1, w2, b2):
    h = x @ w1 + b1
    h = jnp.where(h > 0, h, jnp.exp(h) - 1.0)
    logits = h @ w2 + b2
    return jax.nn.softmax(logits, axis=1)


if __name__ == "__main__":
    # Shapes implied by the module: x (batch, input_size); fc1 -> hidden; fc2 -> num_classes=4.
    batch, input_size, hidden_size, num_classes = 8, 32, 32, 4

    key = jax.random.PRNGKey(0)
    kx, k1, kb1, k2, kb2 = jax.random.split(key, 5)

    x = jax.random.normal(kx, (batch, input_size), dtype=jnp.float32)

    # Deterministic parameter init (uniform in +-1/sqrt(fan_in), like torch Linear default).
    bound1 = 1.0 / jnp.sqrt(jnp.float32(input_size))
    w1 = jax.random.uniform(k1, (input_size, hidden_size), jnp.float32, -bound1, bound1)
    b1 = jax.random.uniform(kb1, (1, hidden_size), jnp.float32, -bound1, bound1)

    bound2 = 1.0 / jnp.sqrt(jnp.float32(hidden_size))
    w2 = jax.random.uniform(k2, (hidden_size, num_classes), jnp.float32, -bound2, bound2)
    b2 = jax.random.uniform(kb2, (1, num_classes), jnp.float32, -bound2, bound2)

    out = mlp_forward(x, w1, b1, w2, b2)
    out = jax.block_until_ready(out)

    ref = reference_forward(x, w1, b1, w2, b2)
    assert out.shape == (batch, num_classes)
    assert jnp.allclose(out, ref, atol=1e-5, rtol=1e-5), "mismatch vs reference"
    assert jnp.allclose(jnp.sum(out, axis=1), 1.0, atol=1e-5), "softmax rows must sum to 1"

    print("KERNEL_OK")
</pallas_src>

<mosaic_0001>
module attributes {stable_mosaic.version = 11 : i64} {
  func.func @mlp_kernel(%arg0: i32, %arg1: memref<8x32xf32, #tpu.memory_space<vmem>>, %arg2: memref<32x128xf32, #tpu.memory_space<vmem>>, %arg3: memref<1x128xf32, #tpu.memory_space<vmem>>, %arg4: memref<128x128xf32, #tpu.memory_space<vmem>>, %arg5: memref<1x128xf32, #tpu.memory_space<vmem>>, %arg6: memref<8x4xf32, #tpu.memory_space<vmem>>) attributes {dimension_semantics = [#tpu.dimension_semantics<parallel>], iteration_bounds = array<i64: 1>, scalar_prefetch = 0 : i64, scratch_operands = 0 : i64, tpu.core_type = #tpu.core_type<tc>, window_params = [{transform_indices = @transform_0, window_bounds = array<i64: 8, 32>}, {pipeline_mode = #tpu.pipeline_mode<synchronous>, transform_indices = @transform_1, window_bounds = array<i64: 32, 128>}, {pipeline_mode = #tpu.pipeline_mode<synchronous>, transform_indices = @transform_2, window_bounds = array<i64: 1, 128>}, {pipeline_mode = #tpu.pipeline_mode<synchronous>, transform_indices = @transform_3, window_bounds = array<i64: 128, 128>}, {pipeline_mode = #tpu.pipeline_mode<synchronous>, transform_indices = @transform_4, window_bounds = array<i64: 1, 128>}, {transform_indices = @transform_5, window_bounds = array<i64: 8, 4>}]} {
    %c0 = arith.constant 0 : index
    %c0_0 = arith.constant 0 : index
    %0 = vector.load %arg1[%c0, %c0_0] : memref<8x32xf32, #tpu.memory_space<vmem>>, vector<8x32xf32>
    %c0_1 = arith.constant 0 : index
    %c0_2 = arith.constant 0 : index
    %1 = vector.load %arg2[%c0_1, %c0_2] : memref<32x128xf32, #tpu.memory_space<vmem>>, vector<32x128xf32>
    %cst = arith.constant dense<0.000000e+00> : vector<8x128xf32>
    %2 = tpu.matmul %0, %1, %cst {dimension_numbers = #tpu.dot_dimension_numbers<[1], [0], [0], [1], [0, 0, 1, 1], [], []>} : vector<8x32xf32>, vector<32x128xf32>, vector<8x128xf32> -> vector<8x128xf32>
    %c0_3 = arith.constant 0 : index
    %c0_4 = arith.constant 0 : index
    %3 = vector.load %arg3[%c0_3, %c0_4] : memref<1x128xf32, #tpu.memory_space<vmem>>, vector<1x128xf32>
    %4 = vector.broadcast %3 : vector<1x128xf32> to vector<8x128xf32>
    %5 = arith.addf %2, %4 : vector<8x128xf32>
    %cst_5 = arith.constant 0.000000e+00 : f32
    %6 = vector.broadcast %cst_5 : f32 to vector<8x128xf32>
    %7 = arith.cmpf ogt, %5, %6 : vector<8x128xf32>
    %8 = math.exp %5 : vector<8x128xf32>
    %cst_6 = arith.constant 1.000000e+00 : f32
    %9 = vector.broadcast %cst_6 : f32 to vector<8x128xf32>
    %10 = arith.subf %8, %9 : vector<8x128xf32>
    %11 = arith.select %7, %5, %10 : vector<8x128xi1>, vector<8x128xf32>
    %c0_7 = arith.constant 0 : index
    %c0_8 = arith.constant 0 : index
    %12 = vector.load %arg4[%c0_7, %c0_8] : memref<128x128xf32, #tpu.memory_space<vmem>>, vector<128x128xf32>
    %cst_9 = arith.constant dense<0.000000e+00> : vector<8x128xf32>
    %13 = tpu.matmul %11, %12, %cst_9 {dimension_numbers = #tpu.dot_dimension_numbers<[1], [0], [0], [1], [0, 0, 1, 1], [], []>} : vector<8x128xf32>, vector<128x128xf32>, vector<8x128xf32> -> vector<8x128xf32>
    %c0_10 = arith.constant 0 : index
    %c0_11 = arith.constant 0 : index
    %14 = vector.load %arg5[%c0_10, %c0_11] : memref<1x128xf32, #tpu.memory_space<vmem>>, vector<1x128xf32>
    %15 = vector.broadcast %14 : vector<1x128xf32> to vector<8x128xf32>
    %16 = arith.addf %13, %15 : vector<8x128xf32>
    %cst_12 = arith.constant dense<0xFF800000> : vector<8xf32>
    %17 = vector.multi_reduction <maximumf>, %16, %cst_12 [1] : vector<8x128xf32> to vector<8xf32>
    %18 = vector.shape_cast %17 : vector<8xf32> to vector<8x1xf32>
    %19 = vector.broadcast %18 : vector<8x1xf32> to vector<8x128xf32>
    %20 = arith.subf %16, %19 : vector<8x128xf32>
    %21 = math.exp %20 : vector<8x128xf32>
    %cst_13 = arith.constant dense<0.000000e+00> : vector<8xf32>
    %22 = vector.multi_reduction <add>, %21, %cst_13 [1] : vector<8x128xf32> to vector<8xf32>
    %23 = vector.shape_cast %22 : vector<8xf32> to vector<8x1xf32>
    %24 = tpu.reciprocal %23 : vector<8x1xf32> -> vector<8x1xf32>
    %25 = vector.broadcast %24 : vector<8x1xf32> to vector<8x128xf32>
    %26 = arith.mulf %21, %25 : vector<8x128xf32>
    %27 = vector.extract_strided_slice %26 {offsets = [0, 0], sizes = [8, 4], strides = [1, 1]} : vector<8x128xf32> to vector<8x4xf32>
    %c0_14 = arith.constant 0 : index
    %c0_15 = arith.constant 0 : index
    %28 = vector.load %arg6[%c0_14, %c0_15] : memref<8x4xf32, #tpu.memory_space<vmem>>, vector<8x4xf32>
    tpu.vector_store %arg6[%c0_14, %c0_15], %27 {strides = array<i32>} : memref<8x4xf32, #tpu.memory_space<vmem>>, vector<8x4xf32>,
    return
  }
  func.func @transform_0(%arg0: i32) -> (i32, i32) {
    %c0_i32 = arith.constant 0 : i32
    %c0_i32_0 = arith.constant 0 : i32
    return %arg0, %c0_i32 : i32, i32
  }
  func.func @transform_1(%arg0: i32) -> (i32, i32) {
    %c0_i32 = arith.constant 0 : i32
    %c0_i32_0 = arith.constant 0 : i32
    %c0_i32_1 = arith.constant 0 : i32
    return %c0_i32, %c0_i32_0 : i32, i32
  }
  func.func @transform_2(%arg0: i32) -> (i32, i32) {
    %c0_i32 = arith.constant 0 : i32
    %c0_i32_0 = arith.constant 0 : i32
    %c0_i32_1 = arith.constant 0 : i32
    return %c0_i32, %c0_i32_0 : i32, i32
  }
  func.func @transform_3(%arg0: i32) -> (i32, i32) {
    %c0_i32 = arith.constant 0 : i32
    %c0_i32_0 = arith.constant 0 : i32
    %c0_i32_1 = arith.constant 0 : i32
    return %c0_i32, %c0_i32_0 : i32, i32
  }
  func.func @transform_4(%arg0: i32) -> (i32, i32) {
    %c0_i32 = arith.constant 0 : i32
    %c0_i32_0 = arith.constant 0 : i32
    %c0_i32_1 = arith.constant 0 : i32
    return %c0_i32, %c0_i32_0 : i32, i32
  }
  func.func @transform_5(%arg0: i32) -> (i32, i32) {
    %c0_i32 = arith.constant 0 : i32
    %c0_i32_0 = arith.constant 0 : i32
    return %arg0, %c0_i32 : i32, i32
  }
}

</mosaic_0001>

<bundles_post_ra>
// kernel: tpu_custom_call.1
= control target key start
LH: loop header
LB: loop body
LE: loop exit
PB: predicated region body
PF: predicated region fallthrough
CT: control target
= control target key end

     0   :  { %10 = vsyncpa [#allocation3], 0  ;;  %s535_s0 = inlined_call_operand.hbm [shape: f32[8,32], index: 0, kind: input, shape index: {}]   ;;  %s536_s1 = inlined_call_operand.hbm [shape: f32[32,128], index: 1, kind: input, shape index: {}]   ;;  %s537_s2 = inlined_call_operand.vmem [shape: f32[1,128], index: 2, kind: input, shape index: {}]   ;;  %s538_s3 = inlined_call_operand.hbm [shape: f32[128,128], index: 3, kind: input, shape index: {}]   ;;  %s539_s4 = inlined_call_operand.vmem [shape: f32[1,128], index: 4, kind: input, shape index: {}]   ;;  %s540_s5 = inlined_call_operand.vmem [shape: f32[8,4], index: 5, kind: output, shape index: {}]  }
   0x1   :  { %11 = vsyncpa [#allocation5], 0  ;;  %s446_s18 = smov [#allocation4]   ;;  %s376_s22 = scalar_lea.hbm %s536_s1, 512 }
   0x2   :  { %s27_s19 = sshll.u32 %s446_s18, 4  ;;  %p377_p0 = scmp.ne.s32.totalorder %s536_s1, %s376_s22  ;;  %s28_s19 = int_to_ptr.vmem [resolvable:$true] %s27_s19 }
   0x3   :  { %p380_p1 = scmp.lt.u32.totalorder %s376_s22, %s536_s1 }
   0x5   :  { %p382_p2 = pnand %p380_p1, %p377_p0 }
   0x7   :  { %385 = shalt.err (!%p382_p2)
}
   0x8   :  { %s386_s27 = scalar_lea.vmem %s28_s19, 512  ;;  %p391_p4 = scmp.lt.s32.totalorder %s28_s19, %s28_s19 }
   0x9   :  { %p387_p3 = scmp.ne.s32.totalorder %s28_s19, %s386_s27  ;;  %p392_p5 = scmp.lt.s32.totalorder %s386_s27, %s386_s27 }
   0xb   :  { %p393_p6 = por %p392_p5, %p391_p4 }
   0xd   :  { %p394_p7 = pnand %p393_p6, %p387_p3 }
   0xf   :  { %397 = shalt.err (!%p394_p7)
}
  0x10   :  { %s447_s28 = smov 128   ;;  %s448_s29 = smov 8  }
  0x11   :  { %33 = dma.hbm_to_vmem [thread:$0]  %s536_s1, 512, %s28_s19, [#allocation5], %s447_s28, %s447_s28, %s448_s29  }
  0x12   :  { %s449_s7 = smov [#allocation2]   ;;  %s450_s9 = smov [#allocation6]  }
  0x13   :  { %s18_s8 = sshll.u32 %s449_s7, 4  ;;  %s41_s10 = sshll.u32 %s450_s9, 4  ;;  %s19_s8 = int_to_ptr.vmem [resolvable:$true] %s18_s8  ;;  %s42_s10 = int_to_ptr.vmem [resolvable:$true] %s41_s10 }
  0x14   :  { %s398_s13 = scalar_lea.hbm %s535_s0, 128 }
  0x15   :  { %p399_p8 = scmp.ne.s32.totalorder %s535_s0, %s398_s13  ;;  %p402_p9 = scmp.lt.u32.totalorder %s398_s13, %s535_s0 }
  0x17   :  { %p404_p10 = pnand %p402_p9, %p399_p8 }
  0x19   :  { %407 = shalt.err (!%p404_p10)
}
  0x1a   :  { %s408_s1 = scalar_lea.vmem %s19_s8, 128  ;;  %p413_p12 = scmp.lt.s32.totalorder %s19_s8, %s19_s8 }
  0x1b   :  { %p409_p11 = scmp.ne.s32.totalorder %s19_s8, %s408_s1  ;;  %p414_p13 = scmp.lt.s32.totalorder %s408_s1, %s408_s1 }
  0x1d   :  { %p415_p0 = por %p414_p13, %p413_p12 }
  0x1f   :  { %p416_p1 = pnand %p415_p0, %p409_p11 }
  0x21   :  { %419 = shalt.err (!%p416_p1)
}
  0x22   :  { %21 = dma.hbm_to_vmem [thread:$0]  %s535_s0, 128, %s19_s8, [#allocation3]  }
  0x23   :  { %s420_s22 = scalar_lea.hbm %s538_s3, 2048 }
  0x24   :  { %p421_p2 = scmp.ne.s32.totalorder %s538_s3, %s420_s22  ;;  %p424_p3 = scmp.lt.u32.totalorder %s420_s22, %s538_s3 }
  0x26   :  { %p426_p4 = pnand %p424_p3, %p421_p2 }
  0x28   :  { %429 = shalt.err (!%p426_p4)
}
  0x29   :  { %s430_s27 = scalar_lea.vmem %s42_s10, 2048  ;;  %p435_p6 = scmp.lt.s32.totalorder %s42_s10, %s42_s10 }
  0x2a   :  { %p431_p5 = scmp.ne.s32.totalorder %s42_s10, %s430_s27  ;;  %p436_p7 = scmp.lt.s32.totalorder %s430_s27, %s430_s27 }
  0x2c   :  { %p437_p8 = por %p436_p7, %p435_p6 }
  0x2e   :  { %p438_p9 = pnand %p437_p8, %p431_p5 }
  0x30   :  { %441 = shalt.err (!%p438_p9)
}
  0x31   :  { %47 = dma.hbm_to_vmem [thread:$0]  %s538_s3, 2048, %s42_s10, [#allocation5], %s447_s28, %s447_s28, %s448_s29  }
  0x32   :  { %442 = dma.done.wait [#allocation3], 128  }
  0x33   :  { %443 = vsyncadd [#allocation3], 4294967168 }
  0x34   :  { %444 = dma.done.wait [#allocation5], 2560  }
  0x35   :  { %445 = vsyncadd [#allocation5], 4294964736  ;;  %v451_v0 = vmov 0.0|0.0   ;;  %vm452_vm0 = vmmov 0   ;;  %v453_v1 = vmov 0.0   ;;  %v60_v2 = vld [vmem:[#allocation4] sm:$0xff] }
  0x36   :  { %332 = vmatprep.subr.bf16.mxu0 %v451_v0  ;;  %294 = vmatprep.mubr.msk.f32.mxu0 %vm452_vm0, %v453_v1  ;;  %v61_v3 = vld [vmem:[#allocation4 + $0x8] sm:$0xff]  ;;  %v62_v4 = vld [vmem:[#allocation4 + $0x10] sm:$0xff]  ;;  %v63_v6 = vld [vmem:[#allocation4 + $0x18] sm:$0xff]  ;;  %vm71_vm1 = vcmask 261120   ;;  %vm252_vm3 = vcmask 31744  }
  0x37   :  { %338 = vmatprep.subr.bf16.mxu1 %v451_v0  ;;  %329 = vmatprep.mubr.msk.f32.mxu1 %vm452_vm0, %v453_v1  ;;  %v333_v5 = vpack.c.bf16 %v61_v3, %v60_v2  ;;  %v150_v7 = vld [vmem:[#allocation6] sm:$0xff]  ;;  %v151_v8 = vld [vmem:[#allocation6 + $0x8] sm:$0xff]  ;;  %v152_v9 = vld [vmem:[#allocation6 + $0x10] sm:$0xff]  ;;  %v336_v11 = vpack.c.bf16 %v63_v6, %v62_v4 }
  0x38   :  { %v153_v10 = vld [vmem:[#allocation6 + $0x18] sm:$0xff]  ;;  %v339_v12 = vpack.c.bf16 %v151_v8, %v150_v7  ;;  %v154_v14 = vld [vmem:[#allocation6 + $0x20] sm:$0xff]  ;;  %v155_v15 = vld [vmem:[#allocation6 + $0x28] sm:$0xff] }
  0x39   :  { %334 = vmatpush3.bf16.msra.mxu0 %v333_v5  ;;  %v342_v13 = vpack.c.bf16 %v153_v10, %v152_v9  ;;  %v59_v16 = vld [vmem:[#allocation2] sm:$0xff]  ;;  %v345_v17 = vpack.c.bf16 %v155_v15, %v154_v14  ;;  %v156_v18 = vld [vmem:[#allocation6 + $0x30] sm:$0xff]  ;;  %v158_v21 = vld [vmem:[#allocation6 + $0x40] sm:$0xff] }
  0x3a   :  { %335 = vmatprep.subr.bf16.mxu0 %v451_v0  ;;  %340 = vmatpush3.bf16.msra.mxu1 %v339_v12  ;;  %v157_v19 = vld [vmem:[#allocation6 + $0x38] sm:$0xff]  ;;  %v159_v22 = vld [vmem:[#allocation6 + $0x48] sm:$0xff]  ;;  %v160_v24 = vld [vmem:[#allocation6 + $0x50] sm:$0xff] }
  0x3b   :  { %341 = vmatprep.subr.bf16.mxu1 %v451_v0  ;;  %v348_v20 = vpack.c.bf16 %v157_v19, %v156_v18  ;;  %v351_v23 = vpack.c.bf16 %v159_v22, %v158_v21  ;;  %v161_v25 = vld [vmem:[#allocation6 + $0x58] sm:$0xff]  ;;  %v162_v26 = vld [vmem:[#allocation6 + $0x60] sm:$0xff]  ;;  %v163_v28 = vld [vmem:[#allocation6 + $0x68] sm:$0xff] }
  0x3c   :  { %v354_v27 = vpack.c.bf16 %v161_v25, %v160_v24  ;;  %v357_v29 = vpack.c.bf16 %v163_v28, %v162_v26  ;;  %v164_v30 = vld [vmem:[#allocation6 + $0x70] sm:$0xff]  ;;  %v165_v31 = vld [vmem:[#allocation6 + $0x78] sm:$0xff] }
  0x3d   :  { %337 = vmatpush3.bf16.msra.mxu0 %v336_v11  ;;  %v360_v32 = vpack.c.bf16 %v165_v31, %v164_v30  ;;  %v260_v33 = vld [vmem:[%s537_s2] ss:$0 sm:$0xff] }
  0x3e   :  { %343 = vmatpush3.bf16.msra.mxu1 %v342_v13  ;;  %v263_v41 = vld [vmem:[%s539_s4] ss:$0 sm:$0xff] }
  0x3f   :  { %344 = vmatprep.subr.bf16.mxu1 %v451_v0 }
  0x40   :  { %295 = vmatmul.mubr.msk.f32.vlgmr.msra.gmra.mrb[0].mxu0 %vm71_vm1, %v59_v16 }
  0x42   :  { %346 = vmatpush3.bf16.msra.mxu1 %v345_v17 }
  0x43   :  { %347 = vmatprep.subr.bf16.mxu1 %v451_v0 }
  0x46   :  { %349 = vmatpush3.bf16.msra.mxu1 %v348_v20 }
  0x47   :  { %350 = vmatprep.subr.bf16.mxu1 %v451_v0 }
  0x4a   :  { %352 = vmatpush3.bf16.msra.mxu1 %v351_v23 }
  0x4b   :  { %353 = vmatprep.subr.bf16.mxu1 %v451_v0 }
  0x4e   :  { %355 = vmatpush3.bf16.msra.mxu1 %v354_v27 }
  0x4f   :  { %356 = vmatprep.subr.bf16.mxu1 %v451_v0 }
  0x52   :  { %358 = vmatpush3.bf16.msra.mxu1 %v357_v29 }
  0x53   :  { %359 = vmatprep.subr.bf16.mxu1 %v451_v0 }
  0x56   :  { %361 = vmatpush3.bf16.msra.mxu1 %v360_v32 }
 0x113   :  { %v141_v34 = vpop.f32.mrb[0].mxu0 }
 0x114   :  { %v142_v35 = vadd.f32 %v260_v33, %v141_v34  ;;  %v296_v36 = vpop.f32.mrb[1].mxu0 }
 0x116   :  { %v146_v37 = vmul.f32 1.442695, %v142_v35  ;;  %vm145_vm2 = vcmp.gt.f32.partialorder %v142_v35, 0.0 }
 0x118   :  { %370 = vpow2.f32 %v146_v37 }
 0x122   :  { %v371_v38 = vpop.eup %370 }
 0x123   :  { %v262_v39 = vadd.f32 -1.0, %v371_v38 }
 0x125   :  { %v149_v40 = vsel %vm145_vm2, %v142_v35, %v262_v39 }
 0x126   :  { %330 = vmatmul.mubr.f32.vlgmr.msra.gmra.mrb[0].mxu1 %v149_v40 }
 0x1f9   :  { %v239_v42 = vpop.f32.mrb[0].mxu1 }
 0x1fa   :  { %v240_v43 = vadd.f32 %v263_v41, %v239_v42  ;;  %v331_v44 = vpop.f32.mrb[1].mxu1 }
 0x1fc   :  { %243 = vmax.xlane.f32.xlu0 %v240_v43 }
 0x289   :  { %v244_v45 = vpop.xlane.xlu0 %243 }
 0x28a   :  { %v245_v46 = vsub.f32 %v240_v43, %v244_v45 }
 0x28c   :  { %v246_v47 = vmul.f32 1.442695, %v245_v46 }
 0x28e   :  { %372 = vpow2.f32 %v246_v47 }
 0x298   :  { %v373_v48 = vpop.eup %372 }
 0x299   :  { %248 = vadd.xlane.f32.xlu0 %v373_v48 }
 0x326   :  { %v249_v49 = vpop.xlane.xlu0 %248 }
 0x327   :  { %374 = vrcp.f32 %v249_v49 }
 0x331   :  { %v375_v50 = vpop.eup %374 }
 0x332   :  { %v251_v51 = vmul.f32 %v375_v50, %v373_v48 }
 0x334   :  { %253 = vst.msk [vmem:[%s540_s5] sm:$0xff] %vm252_vm3, %v251_v51 }
 0x335   :  { %258 = vsyncpa [#allocation3], 1 }
 0x336   :  { %259 = vsyncpa [#allocation5], 1 }

</bundles_post_ra>
